<compile_context>
chip_gen: v6e
topology: v6e:2x2x1
jax: 0.10.0
libtpu: 0.0.40
codegen_flags: <defaults>
</compile_context>

<pallas_src>
import functools

import jax
import jax.numpy as jnp
from jax.experimental import pallas as pl
from jax.experimental.pallas import tpu as pltpu


def _shift_lanes(y, off):
    """Return z with z[:, p] = y[:, p + off] for in-range p+off, else 0.

    `off` is a static Python int; implemented as a lane slice + concat with a
    zero block (semantics-exact, no reliance on roll direction conventions).
    """
    if off == 0:
        return y
    rows = y.shape[0]
    pad = jnp.zeros((rows, abs(off)), y.dtype)
    if off > 0:
        return jnp.concatenate([y[:, off:], pad], axis=-1)
    return jnp.concatenate([pad, y[:, :off]], axis=-1)


def _med_conv_block_kernel(x_ref, w1_ref, w2_ref, w3_ref, m_ref,
                           s1_ref, t1_ref, s2_ref, t2_ref, s3_ref, t3_ref,
                           o_ref, *, W):
    x = x_ref[0].astype(jnp.float32)                       # (C, S), S = H*W
    S = x.shape[1]

    # ---- conv1 (1x1, no bias) + bn1 + relu --------------------------------
    w1 = w1_ref[...].astype(jnp.float32)                   # (med, C)
    y = jnp.dot(w1, x, preferred_element_type=jnp.float32)  # (med, S)
    y = jnp.maximum(y * s1_ref[...] + t1_ref[...], 0.0)

    # ---- conv2 (3x3, pad=1, groups=1, no bias) + bn2 + relu ---------------
    med = w2_ref.shape[1]
    acc = jnp.zeros((med, S), jnp.float32)
    for ky in range(3):                                    # static 9-tap unroll
        for kx in range(3):
            t = ky * 3 + kx
            off = (ky - 1) * W + (kx - 1)
            shifted = _shift_lanes(y, off) * m_ref[t]      # (med,S) * (1,S)
            wtap = w2_ref[t].astype(jnp.float32)           # (med, med)
            acc = acc + jnp.dot(wtap, shifted,
                                preferred_element_type=jnp.float32)
    y = jnp.maximum(acc * s2_ref[...] + t2_ref[...], 0.0)

    # ---- conv3 (1x1, no bias) + bn3 + residual + relu ---------------------
    w3 = w3_ref[...].astype(jnp.float32)                   # (C, med)
    z = jnp.dot(w3, y, preferred_element_type=jnp.float32)  # (C, S)
    z = z * s3_ref[...] + t3_ref[...]
    o_ref[0] = jnp.maximum(z + x, 0.0).astype(o_ref.dtype)


def med_conv_block_forward(x, params, *, eps=1e-6):
    """x: (B, C, H, W) NCHW, params: dict of conv weights + BN tuples."""
    B, C, H, W = x.shape
    med = C // 4
    S = H * W
    assert S % 128 == 0 and C % 8 == 0, "toy sizes chosen to be tile-friendly"

    # channels-first 2-D view: (B, C, S) with S as the lane dimension.
    x2d = x.reshape(B, C, S)

    w1 = params["conv1_w"].reshape(med, C)                       # (med, C)
    w2 = params["conv2_w"].transpose(2, 3, 0, 1).reshape(9, med, med)
    w3 = params["conv3_w"].reshape(C, med)                       # (C, med)

    def fold_bn(gamma, beta, mean, var):
        scale = gamma / jnp.sqrt(var + eps)
        shift = beta - mean * scale
        return (scale[:, None].astype(jnp.float32),
                shift[:, None].astype(jnp.float32))

    s1, t1 = fold_bn(*params["bn1"])
    s2, t2 = fold_bn(*params["bn2"])
    s3, t3 = fold_bn(*params["bn3"])

    # Precompute the 9 zero-padding boundary masks (1 where the shifted
    # neighbour (i+dy, j+dx) is inside the image). Shape (9, 1, S).
    ii = jnp.arange(H)
    jj = jnp.arange(W)
    masks = []
    for ky in range(3):
        for kx in range(3):
            dy, dx = ky - 1, kx - 1
            mrow = ((ii + dy >= 0) & (ii + dy < H)).astype(jnp.float32)
            mcol = ((jj + dx >= 0) & (jj + dx < W)).astype(jnp.float32)
            masks.append((mrow[:, None] * mcol[None, :]).reshape(1, S))
    mask_stack = jnp.stack(masks, axis=0)                        # (9, 1, S)

    kernel = functools.partial(_med_conv_block_kernel, W=W)

    def const_spec(shape):
        return pl.BlockSpec(shape, lambda b, _n=len(shape): (0,) * _n)

    out2d = pl.pallas_call(
        kernel,
        out_shape=jax.ShapeDtypeStruct((B, C, S), x.dtype),
        grid_spec=pltpu.PrefetchScalarGridSpec(
            num_scalar_prefetch=0,
            grid=(B,),
            in_specs=[
                pl.BlockSpec((1, C, S), lambda b: (b, 0, 0)),    # x
                const_spec((med, C)),                            # conv1 w
                const_spec((9, med, med)),                       # conv2 taps
                const_spec((C, med)),                            # conv3 w
                const_spec((9, 1, S)),                           # pad masks
                const_spec((med, 1)), const_spec((med, 1)),      # bn1 scale/shift
                const_spec((med, 1)), const_spec((med, 1)),      # bn2 scale/shift
                const_spec((C, 1)), const_spec((C, 1)),          # bn3 scale/shift
            ],
            out_specs=pl.BlockSpec((1, C, S), lambda b: (b, 0, 0)),
        ),
        compiler_params=pltpu.CompilerParams(
            dimension_semantics=("parallel",),
            vmem_limit_bytes=32 * 1024 * 1024,
        ),
    )(x2d, w1, w2, w3, mask_stack, s1, t1, s2, t2, s3, t3)

    return out2d.reshape(B, C, H, W)


def med_conv_block_reference(x, params, *, eps=1e-6):
    """Pure-JAX reference mirroring the PyTorch forward (inference BN)."""
    def bn(y, gamma, beta, mean, var):
        inv = 1.0 / jnp.sqrt(var + eps)
        return ((y - mean[None, :, None, None]) * (gamma * inv)[None, :, None, None]
                + beta[None, :, None, None])

    dn = ("NCHW", "OIHW", "NCHW")
    y = jax.lax.conv_general_dilated(x, params["conv1_w"], (1, 1), "VALID",
                                     dimension_numbers=dn)
    y = jax.nn.relu(bn(y, *params["bn1"]))
    y = jax.lax.conv_general_dilated(y, params["conv2_w"], (1, 1),
                                     ((1, 1), (1, 1)), dimension_numbers=dn)
    y = jax.nn.relu(bn(y, *params["bn2"]))
    y = jax.lax.conv_general_dilated(y, params["conv3_w"], (1, 1), "VALID",
                                     dimension_numbers=dn)
    y = bn(y, *params["bn3"])
    return jax.nn.relu(y + x)


if __name__ == "__main__":
    B, inplanes, H, W = 2, 32, 16, 16       # expansion=4 -> med_planes = 8
    med = inplanes // 4

    key = jax.random.PRNGKey(0)
    ks = jax.random.split(key, 16)

    def bn_params(kg, kb, km, kv, c):
        return (1.0 + 0.1 * jax.random.normal(kg, (c,), jnp.float32),   # gamma
                0.1 * jax.random.normal(kb, (c,), jnp.float32),         # beta
                0.1 * jax.random.normal(km, (c,), jnp.float32),         # mean
                jax.random.uniform(kv, (c,), jnp.float32, 0.5, 1.5))    # var

    x = jax.random.normal(ks[0], (B, inplanes, H, W), jnp.float32)
    params = {
        "conv1_w": 0.1 * jax.random.normal(ks[1], (med, inplanes, 1, 1), jnp.float32),
        "conv2_w": 0.1 * jax.random.normal(ks[2], (med, med, 3, 3), jnp.float32),
        "conv3_w": 0.1 * jax.random.normal(ks[3], (inplanes, med, 1, 1), jnp.float32),
        "bn1": bn_params(ks[4], ks[5], ks[6], ks[7], med),
        "bn2": bn_params(ks[8], ks[9], ks[10], ks[11], med),
        "bn3": bn_params(ks[12], ks[13], ks[14], ks[15], inplanes),
    }

    out = med_conv_block_forward(x, params)
    out = jax.block_until_ready(out)

    ref = med_conv_block_reference(x, params)
    assert out.shape == x.shape
    # Tolerance accounts for MXU bf16-operand rounding differences between the
    # Pallas matmul formulation and XLA's convolution; logic errors would be
    # orders of magnitude larger.
    max_err = jnp.max(jnp.abs(out - ref))
    assert jnp.allclose(out, ref, atol=5e-3, rtol=5e-3), f"max abs err = {max_err}"

    print("KERNEL_OK")
</pallas_src>

<mosaic_0001>
module attributes {stable_mosaic.version = 11 : i64} {
  func.func @_med_conv_block_kernel(%arg0: i32, %arg1: memref<1x32x256xf32, #tpu.memory_space<vmem>>, %arg2: memref<8x32xf32, #tpu.memory_space<vmem>>, %arg3: memref<9x8x8xf32, #tpu.memory_space<vmem>>, %arg4: memref<32x8xf32, #tpu.memory_space<vmem>>, %arg5: memref<9x1x256xf32, #tpu.memory_space<vmem>>, %arg6: memref<8x1xf32, #tpu.memory_space<vmem>>, %arg7: memref<8x1xf32, #tpu.memory_space<vmem>>, %arg8: memref<8x1xf32, #tpu.memory_space<vmem>>, %arg9: memref<8x1xf32, #tpu.memory_space<vmem>>, %arg10: memref<32x1xf32, #tpu.memory_space<vmem>>, %arg11: memref<32x1xf32, #tpu.memory_space<vmem>>, %arg12: memref<1x32x256xf32, #tpu.memory_space<vmem>>) attributes {dimension_semantics = [#tpu.dimension_semantics<parallel>], iteration_bounds = array<i64: 2>, scalar_prefetch = 0 : i64, scratch_operands = 0 : i64, tpu.core_type = #tpu.core_type<tc>, window_params = [{transform_indices = @transform_0, window_bounds = array<i64: 1, 32, 256>}, {pipeline_mode = #tpu.pipeline_mode<synchronous>, transform_indices = @transform_1, window_bounds = array<i64: 8, 32>}, {pipeline_mode = #tpu.pipeline_mode<synchronous>, transform_indices = @transform_2, window_bounds = array<i64: 9, 8, 8>}, {pipeline_mode = #tpu.pipeline_mode<synchronous>, transform_indices = @transform_3, window_bounds = array<i64: 32, 8>}, {pipeline_mode = #tpu.pipeline_mode<synchronous>, transform_indices = @transform_4, window_bounds = array<i64: 9, 1, 256>}, {pipeline_mode = #tpu.pipeline_mode<synchronous>, transform_indices = @transform_5, window_bounds = array<i64: 8, 1>}, {pipeline_mode = #tpu.pipeline_mode<synchronous>, transform_indices = @transform_6, window_bounds = array<i64: 8, 1>}, {pipeline_mode = #tpu.pipeline_mode<synchronous>, transform_indices = @transform_7, window_bounds = array<i64: 8, 1>}, {pipeline_mode = #tpu.pipeline_mode<synchronous>, transform_indices = @transform_8, window_bounds = array<i64: 8, 1>}, {pipeline_mode = #tpu.pipeline_mode<synchronous>, transform_indices = @transform_9, window_bounds = array<i64: 32, 1>}, {pipeline_mode = #tpu.pipeline_mode<synchronous>, transform_indices = @transform_10, window_bounds = array<i64: 32, 1>}, {transform_indices = @transform_11, window_bounds = array<i64: 1, 32, 256>}]} {
    %c0 = arith.constant 0 : index
    %c0_0 = arith.constant 0 : index
    %c0_1 = arith.constant 0 : index
    %0 = vector.load %arg1[%c0, %c0_0, %c0_1] : memref<1x32x256xf32, #tpu.memory_space<vmem>>, vector<1x32x256xf32>
    %1 = vector.shape_cast %0 : vector<1x32x256xf32> to vector<32x256xf32>
    %c0_2 = arith.constant 0 : index
    %c0_3 = arith.constant 0 : index
    %2 = vector.load %arg2[%c0_2, %c0_3] : memref<8x32xf32, #tpu.memory_space<vmem>>, vector<8x32xf32>
    %cst = arith.constant dense<0.000000e+00> : vector<8x256xf32>
    %3 = tpu.matmul %2, %1, %cst {dimension_numbers = #tpu.dot_dimension_numbers<[1], [0], [0], [1], [0, 0, 1, 1], [], []>} : vector<8x32xf32>, vector<32x256xf32>, vector<8x256xf32> -> vector<8x256xf32>
    %c0_4 = arith.constant 0 : index
    %c0_5 = arith.constant 0 : index
    %4 = vector.load %arg6[%c0_4, %c0_5] : memref<8x1xf32, #tpu.memory_space<vmem>>, vector<8x1xf32>
    %5 = vector.broadcast %4 : vector<8x1xf32> to vector<8x256xf32>
    %6 = arith.mulf %3, %5 : vector<8x256xf32>
    %c0_6 = arith.constant 0 : index
    %c0_7 = arith.constant 0 : index
    %7 = vector.load %arg7[%c0_6, %c0_7] : memref<8x1xf32, #tpu.memory_space<vmem>>, vector<8x1xf32>
    %8 = vector.broadcast %7 : vector<8x1xf32> to vector<8x256xf32>
    %9 = arith.addf %6, %8 : vector<8x256xf32>
    %cst_8 = arith.constant 0.000000e+00 : f32
    %10 = vector.broadcast %cst_8 : f32 to vector<8x256xf32>
    %11 = arith.maximumf %9, %10 : vector<8x256xf32>
    %cst_9 = arith.constant 0.000000e+00 : f32
    %12 = vector.broadcast %cst_9 : f32 to vector<8x256xf32>
    %cst_10 = arith.constant 0.000000e+00 : f32
    %13 = vector.broadcast %cst_10 : f32 to vector<8x17xf32>
    %14 = vector.extract_strided_slice %11 {offsets = [0, 0], sizes = [8, 239], strides = [1, 1]} : vector<8x256xf32> to vector<8x239xf32>
    %15 = tpu.concatenate %13, %14 in 1 : vector<8x17xf32>, vector<8x239xf32> -> vector<8x256xf32>
    %c0_11 = arith.constant 0 : index
    %c0_12 = arith.constant 0 : index
    %c0_13 = arith.constant 0 : index
    %16 = vector.load %arg5[%c0_11, %c0_12, %c0_13] : memref<9x1x256xf32, #tpu.memory_space<vmem>>, vector<1x1x256xf32>
    %17 = vector.shape_cast %16 : vector<1x1x256xf32> to vector<1x256xf32>
    %18 = vector.broadcast %17 : vector<1x256xf32> to vector<8x256xf32>
    %19 = arith.mulf %15, %18 : vector<8x256xf32>
    %c0_14 = arith.constant 0 : index
    %c0_15 = arith.constant 0 : index
    %c0_16 = arith.constant 0 : index
    %20 = vector.load %arg3[%c0_14, %c0_15, %c0_16] : memref<9x8x8xf32, #tpu.memory_space<vmem>>, vector<1x8x8xf32>
    %21 = vector.shape_cast %20 : vector<1x8x8xf32> to vector<8x8xf32>
    %cst_17 = arith.constant dense<0.000000e+00> : vector<8x256xf32>
    %22 = tpu.matmul %21, %19, %cst_17 {dimension_numbers = #tpu.dot_dimension_numbers<[1], [0], [0], [1], [0, 0, 1, 1], [], []>} : vector<8x8xf32>, vector<8x256xf32>, vector<8x256xf32> -> vector<8x256xf32>
    %23 = arith.addf %12, %22 : vector<8x256xf32>
    %cst_18 = arith.constant 0.000000e+00 : f32
    %24 = vector.broadcast %cst_18 : f32 to vector<8x16xf32>
    %25 = vector.extract_strided_slice %11 {offsets = [0, 0], sizes = [8, 240], strides = [1, 1]} : vector<8x256xf32> to vector<8x240xf32>
    %26 = tpu.concatenate %24, %25 in 1 : vector<8x16xf32>, vector<8x240xf32> -> vector<8x256xf32>
    %c1 = arith.constant 1 : index
    %c0_19 = arith.constant 0 : index
    %c0_20 = arith.constant 0 : index
    %27 = vector.load %arg5[%c1, %c0_19, %c0_20] : memref<9x1x256xf32, #tpu.memory_space<vmem>>, vector<1x1x256xf32>
    %28 = vector.shape_cast %27 : vector<1x1x256xf32> to vector<1x256xf32>
    %29 = vector.broadcast %28 : vector<1x256xf32> to vector<8x256xf32>
    %30 = arith.mulf %26, %29 : vector<8x256xf32>
    %c1_21 = arith.constant 1 : index
    %c0_22 = arith.constant 0 : index
    %c0_23 = arith.constant 0 : index
    %31 = vector.load %arg3[%c1_21, %c0_22, %c0_23] : memref<9x8x8xf32, #tpu.memory_space<vmem>>, vector<1x8x8xf32>
    %32 = vector.shape_cast %31 : vector<1x8x8xf32> to vector<8x8xf32>
    %cst_24 = arith.constant dense<0.000000e+00> : vector<8x256xf32>
    %33 = tpu.matmul %32, %30, %cst_24 {dimension_numbers = #tpu.dot_dimension_numbers<[1], [0], [0], [1], [0, 0, 1, 1], [], []>} : vector<8x8xf32>, vector<8x256xf32>, vector<8x256xf32> -> vector<8x256xf32>
    %34 = arith.addf %23, %33 : vector<8x256xf32>
    %cst_25 = arith.constant 0.000000e+00 : f32
    %35 = vector.broadcast %cst_25 : f32 to vector<8x15xf32>
    %36 = vector.extract_strided_slice %11 {offsets = [0, 0], sizes = [8, 241], strides = [1, 1]} : vector<8x256xf32> to vector<8x241xf32>
    %37 = tpu.concatenate %35, %36 in 1 : vector<8x15xf32>, vector<8x241xf32> -> vector<8x256xf32>
    %c2 = arith.constant 2 : index
    %c0_26 = arith.constant 0 : index
    %c0_27 = arith.constant 0 : index
    %38 = vector.load %arg5[%c2, %c0_26, %c0_27] : memref<9x1x256xf32, #tpu.memory_space<vmem>>, vector<1x1x256xf32>
    %39 = vector.shape_cast %38 : vector<1x1x256xf32> to vector<1x256xf32>
    %40 = vector.broadcast %39 : vector<1x256xf32> to vector<8x256xf32>
    %41 = arith.mulf %37, %40 : vector<8x256xf32>
    %c2_28 = arith.constant 2 : index
    %c0_29 = arith.constant 0 : index
    %c0_30 = arith.constant 0 : index
    %42 = vector.load %arg3[%c2_28, %c0_29, %c0_30] : memref<9x8x8xf32, #tpu.memory_space<vmem>>, vector<1x8x8xf32>
    %43 = vector.shape_cast %42 : vector<1x8x8xf32> to vector<8x8xf32>
    %cst_31 = arith.constant dense<0.000000e+00> : vector<8x256xf32>
    %44 = tpu.matmul %43, %41, %cst_31 {dimension_numbers = #tpu.dot_dimension_numbers<[1], [0], [0], [1], [0, 0, 1, 1], [], []>} : vector<8x8xf32>, vector<8x256xf32>, vector<8x256xf32> -> vector<8x256xf32>
    %45 = arith.addf %34, %44 : vector<8x256xf32>
    %cst_32 = arith.constant 0.000000e+00 : f32
    %46 = vector.broadcast %cst_32 : f32 to vector<8x1xf32>
    %47 = vector.extract_strided_slice %11 {offsets = [0, 0], sizes = [8, 255], strides = [1, 1]} : vector<8x256xf32> to vector<8x255xf32>
    %48 = tpu.concatenate %46, %47 in 1 : vector<8x1xf32>, vector<8x255xf32> -> vector<8x256xf32>
    %c3 = arith.constant 3 : index
    %c0_33 = arith.constant 0 : index
    %c0_34 = arith.constant 0 : index
    %49 = vector.load %arg5[%c3, %c0_33, %c0_34] : memref<9x1x256xf32, #tpu.memory_space<vmem>>, vector<1x1x256xf32>
    %50 = vector.shape_cast %49 : vector<1x1x256xf32> to vector<1x256xf32>
    %51 = vector.broadcast %50 : vector<1x256xf32> to vector<8x256xf32>
    %52 = arith.mulf %48, %51 : vector<8x256xf32>
    %c3_35 = arith.constant 3 : index
    %c0_36 = arith.constant 0 : index
    %c0_37 = arith.constant 0 : index
    %53 = vector.load %arg3[%c3_35, %c0_36, %c0_37] : memref<9x8x8xf32, #tpu.memory_space<vmem>>, vector<1x8x8xf32>
    %54 = vector.shape_cast %53 : vector<1x8x8xf32> to vector<8x8xf32>
    %cst_38 = arith.constant dense<0.000000e+00> : vector<8x256xf32>
    %55 = tpu.matmul %54, %52, %cst_38 {dimension_numbers = #tpu.dot_dimension_numbers<[1], [0], [0], [1], [0, 0, 1, 1], [], []>} : vector<8x8xf32>, vector<8x256xf32>, vector<8x256xf32> -> vector<8x256xf32>
    %56 = arith.addf %45, %55 : vector<8x256xf32>
    %c4 = arith.constant 4 : index
    %c0_39 = arith.constant 0 : index
    %c0_40 = arith.constant 0 : index
    %57 = vector.load %arg5[%c4, %c0_39, %c0_40] : memref<9x1x256xf32, #tpu.memory_space<vmem>>, vector<1x1x256xf32>
    %58 = vector.shape_cast %57 : vector<1x1x256xf32> to vector<1x256xf32>
    %59 = vector.broadcast %58 : vector<1x256xf32> to vector<8x256xf32>
    %60 = arith.mulf %11, %59 : vector<8x256xf32>
    %c4_41 = arith.constant 4 : index
    %c0_42 = arith.constant 0 : index
    %c0_43 = arith.constant 0 : index
    %61 = vector.load %arg3[%c4_41, %c0_42, %c0_43] : memref<9x8x8xf32, #tpu.memory_space<vmem>>, vector<1x8x8xf32>
    %62 = vector.shape_cast %61 : vector<1x8x8xf32> to vector<8x8xf32>
    %cst_44 = arith.constant dense<0.000000e+00> : vector<8x256xf32>
    %63 = tpu.matmul %62, %60, %cst_44 {dimension_numbers = #tpu.dot_dimension_numbers<[1], [0], [0], [1], [0, 0, 1, 1], [], []>} : vector<8x8xf32>, vector<8x256xf32>, vector<8x256xf32> -> vector<8x256xf32>
    %64 = arith.addf %56, %63 : vector<8x256xf32>
    %cst_45 = arith.constant 0.000000e+00 : f32
    %65 = vector.broadcast %cst_45 : f32 to vector<8x1xf32>
    %66 = vector.extract_strided_slice %11 {offsets = [0, 1], sizes = [8, 255], strides = [1, 1]} : vector<8x256xf32> to vector<8x255xf32>
    %67 = tpu.concatenate %66, %65 in 1 : vector<8x255xf32>, vector<8x1xf32> -> vector<8x256xf32>
    %c5 = arith.constant 5 : index
    %c0_46 = arith.constant 0 : index
    %c0_47 = arith.constant 0 : index
    %68 = vector.load %arg5[%c5, %c0_46, %c0_47] : memref<9x1x256xf32, #tpu.memory_space<vmem>>, vector<1x1x256xf32>
    %69 = vector.shape_cast %68 : vector<1x1x256xf32> to vector<1x256xf32>
    %70 = vector.broadcast %69 : vector<1x256xf32> to vector<8x256xf32>
    %71 = arith.mulf %67, %70 : vector<8x256xf32>
    %c5_48 = arith.constant 5 : index
    %c0_49 = arith.constant 0 : index
    %c0_50 = arith.constant 0 : index
    %72 = vector.load %arg3[%c5_48, %c0_49, %c0_50] : memref<9x8x8xf32, #tpu.memory_space<vmem>>, vector<1x8x8xf32>
    %73 = vector.shape_cast %72 : vector<1x8x8xf32> to vector<8x8xf32>
    %cst_51 = arith.constant dense<0.000000e+00> : vector<8x256xf32>
    %74 = tpu.matmul %73, %71, %cst_51 {dimension_numbers = #tpu.dot_dimension_numbers<[1], [0], [0], [1], [0, 0, 1, 1], [], []>} : vector<8x8xf32>, vector<8x256xf32>, vector<8x256xf32> -> vector<8x256xf32>
    %75 = arith.addf %64, %74 : vector<8x256xf32>
    %cst_52 = arith.constant 0.000000e+00 : f32
    %76 = vector.broadcast %cst_52 : f32 to vector<8x15xf32>
    %77 = vector.extract_strided_slice %11 {offsets = [0, 15], sizes = [8, 241], strides = [1, 1]} : vector<8x256xf32> to vector<8x241xf32>
    %78 = tpu.concatenate %77, %76 in 1 : vector<8x241xf32>, vector<8x15xf32> -> vector<8x256xf32>
    %c6 = arith.constant 6 : index
    %c0_53 = arith.constant 0 : index
    %c0_54 = arith.constant 0 : index
    %79 = vector.load %arg5[%c6, %c0_53, %c0_54] : memref<9x1x256xf32, #tpu.memory_space<vmem>>, vector<1x1x256xf32>
    %80 = vector.shape_cast %79 : vector<1x1x256xf32> to vector<1x256xf32>
    %81 = vector.broadcast %80 : vector<1x256xf32> to vector<8x256xf32>
    %82 = arith.mulf %78, %81 : vector<8x256xf32>
    %c6_55 = arith.constant 6 : index
    %c0_56 = arith.constant 0 : index
    %c0_57 = arith.constant 0 : index
    %83 = vector.load %arg3[%c6_55, %c0_56, %c0_57] : memref<9x8x8xf32, #tpu.memory_space<vmem>>, vector<1x8x8xf32>
    %84 = vector.shape_cast %83 : vector<1x8x8xf32> to vector<8x8xf32>
    %cst_58 = arith.constant dense<0.000000e+00> : vector<8x256xf32>
    %85 = tpu.matmul %84, %82, %cst_58 {dimension_numbers = #tpu.dot_dimension_numbers<[1], [0], [0], [1], [0, 0, 1, 1], [], []>} : vector<8x8xf32>, vector<8x256xf32>, vector<8x256xf32> -> vector<8x256xf32>
    %86 = arith.addf %75, %85 : vector<8x256xf32>
    %cst_59 = arith.constant 0.000000e+00 : f32
    %87 = vector.broadcast %cst_59 : f32 to vector<8x16xf32>
    %88 = vector.extract_strided_slice %11 {offsets = [0, 16], sizes = [8, 240], strides = [1, 1]} : vector<8x256xf32> to vector<8x240xf32>
    %89 = tpu.concatenate %88, %87 in 1 : vector<8x240xf32>, vector<8x16xf32> -> vector<8x256xf32>
    %c7 = arith.constant 7 : index
    %c0_60 = arith.constant 0 : index
    %c0_61 = arith.constant 0 : index
    %90 = vector.load %arg5[%c7, %c0_60, %c0_61] : memref<9x1x256xf32, #tpu.memory_space<vmem>>, vector<1x1x256xf32>
    %91 = vector.shape_cast %90 : vector<1x1x256xf32> to vector<1x256xf32>
    %92 = vector.broadcast %91 : vector<1x256xf32> to vector<8x256xf32>
    %93 = arith.mulf %89, %92 : vector<8x256xf32>
    %c7_62 = arith.constant 7 : index
    %c0_63 = arith.constant 0 : index
    %c0_64 = arith.constant 0 : index
    %94 = vector.load %arg3[%c7_62, %c0_63, %c0_64] : memref<9x8x8xf32, #tpu.memory_space<vmem>>, vector<1x8x8xf32>
    %95 = vector.shape_cast %94 : vector<1x8x8xf32> to vector<8x8xf32>
    %cst_65 = arith.constant dense<0.000000e+00> : vector<8x256xf32>
    %96 = tpu.matmul %95, %93, %cst_65 {dimension_numbers = #tpu.dot_dimension_numbers<[1], [0], [0], [1], [0, 0, 1, 1], [], []>} : vector<8x8xf32>, vector<8x256xf32>, vector<8x256xf32> -> vector<8x256xf32>
    %97 = arith.addf %86, %96 : vector<8x256xf32>
    %cst_66 = arith.constant 0.000000e+00 : f32
    %98 = vector.broadcast %cst_66 : f32 to vector<8x17xf32>
    %99 = vector.extract_strided_slice %11 {offsets = [0, 17], sizes = [8, 239], strides = [1, 1]} : vector<8x256xf32> to vector<8x239xf32>
    %100 = tpu.concatenate %99, %98 in 1 : vector<8x239xf32>, vector<8x17xf32> -> vector<8x256xf32>
    %c8 = arith.constant 8 : index
    %c0_67 = arith.constant 0 : index
    %c0_68 = arith.constant 0 : index
    %101 = vector.load %arg5[%c8, %c0_67, %c0_68] : memref<9x1x256xf32, #tpu.memory_space<vmem>>, vector<1x1x256xf32>
    %102 = vector.shape_cast %101 : vector<1x1x256xf32> to vector<1x256xf32>
    %103 = vector.broadcast %102 : vector<1x256xf32> to vector<8x256xf32>
    %104 = arith.mulf %100, %103 : vector<8x256xf32>
    %c8_69 = arith.constant 8 : index
    %c0_70 = arith.constant 0 : index
    %c0_71 = arith.constant 0 : index
    %105 = vector.load %arg3[%c8_69, %c0_70, %c0_71] : memref<9x8x8xf32, #tpu.memory_space<vmem>>, vector<1x8x8xf32>
    %106 = vector.shape_cast %105 : vector<1x8x8xf32> to vector<8x8xf32>
    %cst_72 = arith.constant dense<0.000000e+00> : vector<8x256xf32>
    %107 = tpu.matmul %106, %104, %cst_72 {dimension_numbers = #tpu.dot_dimension_numbers<[1], [0], [0], [1], [0, 0, 1, 1], [], []>} : vector<8x8xf32>, vector<8x256xf32>, vector<8x256xf32> -> vector<8x256xf32>
    %108 = arith.addf %97, %107 : vector<8x256xf32>
    %c0_73 = arith.constant 0 : index
    %c0_74 = arith.constant 0 : index
    %109 = vector.load %arg8[%c0_73, %c0_74] : memref<8x1xf32, #tpu.memory_space<vmem>>, vector<8x1xf32>
    %110 = vector.broadcast %109 : vector<8x1xf32> to vector<8x256xf32>
    %111 = arith.mulf %108, %110 : vector<8x256xf32>
    %c0_75 = arith.constant 0 : index
    %c0_76 = arith.constant 0 : index
    %112 = vector.load %arg9[%c0_75, %c0_76] : memref<8x1xf32, #tpu.memory_space<vmem>>, vector<8x1xf32>
    %113 = vector.broadcast %112 : vector<8x1xf32> to vector<8x256xf32>
    %114 = arith.addf %111, %113 : vector<8x256xf32>
    %cst_77 = arith.constant 0.000000e+00 : f32
    %115 = vector.broadcast %cst_77 : f32 to vector<8x256xf32>
    %116 = arith.maximumf %114, %115 : vector<8x256xf32>
    %c0_78 = arith.constant 0 : index
    %c0_79 = arith.constant 0 : index
    %117 = vector.load %arg4[%c0_78, %c0_79] : memref<32x8xf32, #tpu.memory_space<vmem>>, vector<32x8xf32>
    %cst_80 = arith.constant dense<0.000000e+00> : vector<32x256xf32>
    %118 = tpu.matmul %117, %116, %cst_80 {dimension_numbers = #tpu.dot_dimension_numbers<[1], [0], [0], [1], [0, 0, 1, 1], [], []>} : vector<32x8xf32>, vector<8x256xf32>, vector<32x256xf32> -> vector<32x256xf32>
    %c0_81 = arith.constant 0 : index
    %c0_82 = arith.constant 0 : index
    %119 = vector.load %arg10[%c0_81, %c0_82] : memref<32x1xf32, #tpu.memory_space<vmem>>, vector<32x1xf32>
    %120 = vector.broadcast %119 : vector<32x1xf32> to vector<32x256xf32>
    %121 = arith.mulf %118, %120 : vector<32x256xf32>
    %c0_83 = arith.constant 0 : index
    %c0_84 = arith.constant 0 : index
    %122 = vector.load %arg11[%c0_83, %c0_84] : memref<32x1xf32, #tpu.memory_space<vmem>>, vector<32x1xf32>
    %123 = vector.broadcast %122 : vector<32x1xf32> to vector<32x256xf32>
    %124 = arith.addf %121, %123 : vector<32x256xf32>
    %125 = arith.addf %124, %1 : vector<32x256xf32>
    %cst_85 = arith.constant 0.000000e+00 : f32
    %126 = vector.broadcast %cst_85 : f32 to vector<32x256xf32>
    %127 = arith.maximumf %125, %126 : vector<32x256xf32>
    %c0_86 = arith.constant 0 : index
    %c0_87 = arith.constant 0 : index
    %c0_88 = arith.constant 0 : index
    %128 = vector.load %arg12[%c0_86, %c0_87, %c0_88] : memref<1x32x256xf32, #tpu.memory_space<vmem>>, vector<1x32x256xf32>
    %129 = vector.shape_cast %128 : vector<1x32x256xf32> to vector<32x256xf32>
    %130 = vector.shape_cast %127 : vector<32x256xf32> to vector<1x32x256xf32>
    tpu.vector_store %arg12[%c0_86, %c0_87, %c0_88], %130 {strides = array<i32>} : memref<1x32x256xf32, #tpu.memory_space<vmem>>, vector<1x32x256xf32>,
    return
  }
  func.func @transform_0(%arg0: i32) -> (i32, i32, i32) {
    %c0_i32 = arith.constant 0 : i32
    %c0_i32_0 = arith.constant 0 : i32
    %c0_i32_1 = arith.constant 0 : i32
    return %arg0, %c0_i32, %c0_i32_0 : i32, i32, i32
  }
  func.func @transform_1(%arg0: i32) -> (i32, i32) {
    %c0_i32 = arith.constant 0 : i32
    %c0_i32_0 = arith.constant 0 : i32
    %c0_i32_1 = arith.constant 0 : i32
    return %c0_i32, %c0_i32_0 : i32, i32
  }
  func.func @transform_2(%arg0: i32) -> (i32, i32, i32) {
    %c0_i32 = arith.constant 0 : i32
    %c0_i32_0 = arith.constant 0 : i32
    %c0_i32_1 = arith.constant 0 : i32
    %c0_i32_2 = arith.constant 0 : i32
    return %c0_i32, %c0_i32_0, %c0_i32_1 : i32, i32, i32
  }
  func.func @transform_3(%arg0: i32) -> (i32, i32) {
    %c0_i32 = arith.constant 0 : i32
    %c0_i32_0 = arith.constant 0 : i32
    %c0_i32_1 = arith.constant 0 : i32
    return %c0_i32, %c0_i32_0 : i32, i32
  }
  func.func @transform_4(%arg0: i32) -> (i32, i32, i32) {
    %c0_i32 = arith.constant 0 : i32
    %c0_i32_0 = arith.constant 0 : i32
    %c0_i32_1 = arith.constant 0 : i32
    %c0_i32_2 = arith.constant 0 : i32
    return %c0_i32, %c0_i32_0, %c0_i32_1 : i32, i32, i32
  }
  func.func @transform_5(%arg0: i32) -> (i32, i32) {
    %c0_i32 = arith.constant 0 : i32
    %c0_i32_0 = arith.constant 0 : i32
    %c0_i32_1 = arith.constant 0 : i32
    return %c0_i32, %c0_i32_0 : i32, i32
  }
  func.func @transform_6(%arg0: i32) -> (i32, i32) {
    %c0_i32 = arith.constant 0 : i32
    %c0_i32_0 = arith.constant 0 : i32
    %c0_i32_1 = arith.constant 0 : i32
    return %c0_i32, %c0_i32_0 : i32, i32
  }
  func.func @transform_7(%arg0: i32) -> (i32, i32) {
    %c0_i32 = arith.constant 0 : i32
    %c0_i32_0 = arith.constant 0 : i32
    %c0_i32_1 = arith.constant 0 : i32
    return %c0_i32, %c0_i32_0 : i32, i32
  }
  func.func @transform_8(%arg0: i32) -> (i32, i32) {
    %c0_i32 = arith.constant 0 : i32
    %c0_i32_0 = arith.constant 0 : i32
    %c0_i32_1 = arith.constant 0 : i32
    return %c0_i32, %c0_i32_0 : i32, i32
  }
  func.func @transform_9(%arg0: i32) -> (i32, i32) {
    %c0_i32 = arith.constant 0 : i32
    %c0_i32_0 = arith.constant 0 : i32
    %c0_i32_1 = arith.constant 0 : i32
    return %c0_i32, %c0_i32_0 : i32, i32
  }
  func.func @transform_10(%arg0: i32) -> (i32, i32) {
    %c0_i32 = arith.constant 0 : i32
    %c0_i32_0 = arith.constant 0 : i32
    %c0_i32_1 = arith.constant 0 : i32
    return %c0_i32, %c0_i32_0 : i32, i32
  }
  func.func @transform_11(%arg0: i32) -> (i32, i32, i32) {
    %c0_i32 = arith.constant 0 : i32
    %c0_i32_0 = arith.constant 0 : i32
    %c0_i32_1 = arith.constant 0 : i32
    return %arg0, %c0_i32, %c0_i32_0 : i32, i32, i32
  }
}

</mosaic_0001>

<bundles_post_ra>
// kernel: tpu_custom_call.1
= control target key start
LH: loop header
LB: loop body
LE: loop exit
PB: predicated region body
PF: predicated region fallthrough
CT: control target
= control target key end

     0   :  { %s2271_s0 = inlined_call_operand.vmem [shape: f32[2,32,256], index: 0, kind: input, shape index: {}]   ;;  %s2272_s1 = inlined_call_operand.vmem [shape: f32[8,32], index: 1, kind: input, shape index: {}]   ;;  %s2273_s2 = inlined_call_operand.vmem [shape: f32[9,8,8], index: 2, kind: input, shape index: {}]   ;;  %s2274_s3 = inlined_call_operand.vmem [shape: f32[32,8], index: 3, kind: input, shape index: {}]   ;;  %s2275_s4 = inlined_call_operand.vmem [shape: f32[9,1,256], index: 4, kind: input, shape index: {}]   ;;  %s2276_s5 = inlined_call_operand.vmem [shape: f32[8,1], index: 5, kind: input, shape index: {}]   ;;  %s2277_s6 = inlined_call_operand.vmem [shape: f32[8,1], index: 6, kind: input, shape index: {}]   ;;  %s2278_s7 = inlined_call_operand.vmem [shape: f32[8,1], index: 7, kind: input, shape index: {}]   ;;  %s2279_s8 = inlined_call_operand.vmem [shape: f32[8,1], index: 8, kind: input, shape index: {}]   ;;  %s2280_s9 = inlined_call_operand.vmem [shape: f32[32,1], index: 9, kind: input, shape index: {}]   ;;  %s2281_s10 = inlined_call_operand.vmem [shape: f32[32,1], index: 10, kind: input, shape index: {}]   ;;  %s2282_s11 = inlined_call_operand.hbm [shape: f32[2,32,256], index: 11, kind: output, shape index: {}]  }
   0x1   :  { %2284 = sst [smem:[#allocation5_spill]] %s2271_s0 }
   0x2   :  { %16 = vsyncpa [#allocation3], 0 }
   0x3   :  { %18 = vsyncpa [#allocation3 + $0x1], 0  ;;  %s1910_s17 = smov 0   ;;  %s1912_s18 = smov 0  }
   0x4   :  { %s1914_s19 = smov 0   ;;  %s1916_s20 = smov 0  }
   0x5 LB: > { %s1931_s21 = sadd.s32 4294967295, %s1836_s20   ;;  %s1680_s22 = sadd.s32 4294967294, %s1836_s20   ;;  %s1836_s20 = sphi %s1916_s20, %s2292_s20   ;;  %s1832_s19 = sphi %s1914_s19, %s2291_s19   ;;  %s1828_s18 = sphi %s1912_s18, %s2290_s18   ;;  %s1824_s17 = sphi %s1910_s17, %s2289_s17  }
   0x6   : > { %s1935_s23 = sadd.s32 1, %s1836_s20   ;;  %s267_s24 = sadd.s32 1, %s1832_s19 }
   0x7   : > { %s264_s25 = ssub.s32 %s1836_s20, %s1935_s23  ;;  %p277_p0 = scmp.ne.s32.totalorder %s1832_s19, %s1828_s18 }
   0x8   : > { %p265_p1 = scmp.eq.s32.totalorder %s264_s25, 0  ;;  %p278_p2 = scmp.eq.s32.totalorder %s1931_s21, 1 }
   0x9   : > { %p283_p3 = scmp.ne.s32.totalorder %s1828_s18, %s1824_s17  ;;  %p284_p4 = scmp.eq.s32.totalorder %s1680_s22, 1 }
   0xa   : > { %s1946_s26 = scalar_select %p265_p1, %s1832_s19, %s267_s24  }
   0xb   : > { %p1948_p5 = por %p278_p2, %p277_p0  ;;  %p1952_p6 = por %p284_p4, %p283_p3 }
   0xc   : > { %p1683_p7 = scmp.ge.s32.totalorder %s1836_s20, 1  ;;  %p340_p8 = scmp.lt.s32.totalorder %s1836_s20, 3 }
   0xe   : > { %p341_p9 = pnand %p1683_p7, %p340_p8 }
   0xf   : > { %p380_p10 = scmp.lt.s32.totalorder (!%p341_p9), %s1931_s21, 1  ;;  %s2287_s0 = sld [smem:[#allocation5_spill]] (!%p341_p9) }
  0x10   : > { %344 = sbr.rel (%p341_p9) target bundleno = 818 (0x332), region = 64  ;;  %s2283_s30 = smov (!%p341_p9), 16  }
  0x11   : > { %s1842_s13 = smov (!%p341_p9), 15   ;;  %s1843_s14 = smov (!%p341_p9), 127  }
  0x12   : > { %s1845_s16 = smov (!%p341_p9), 113   ;;  %s1846_s22 = smov (!%p341_p9), 112  }
  0x15   : > { %v469_v0 = vld [vmem:[%s2276_s5] sm:$0xff]  ;;  %v1838_v1 = vmov 0.0   ;;  %v1839_v2 = vmov 0   ;;  %s381_s12 = scalar_select %p380_p10, %s1931_s21, 1  ;;  %vm394_vm0 = vcmask 261120   ;;  %v1518_v25 = vld [vmem:[%s2280_s9 + $0x10] sm:$0xff]  ;;  %v500_v33 = vlaneseq }
  0x16   : > { %462 = vmatprep.mubr.f32.mxu1 %v1838_v1  ;;  %1774 = vset.pattern.permute.xlu0 %v1839_v2  ;;  %v477_v3 = vld [vmem:[%s2277_s6] sm:$0xff]  ;;  %v1550_v28 = vld [vmem:[%s2281_s10 + $0x10] sm:$0xff]  ;;  %v1517_v29 = vld [vmem:[%s2280_s9 + $0x8] sm:$0xff]  ;;  %vm493_vm1 = vcmask 138240   ;;  %vm517_vm2 = vcmask 130048   ;;  %vm539_vm3 = vcmask 64512  }
  0x17   : > { %472 = vperm.xlu0 %1774, %v469_v0   ;;  %607 = vmatprep.mubr.f32.mxu0 %v1838_v1  ;;  %s1722_s15 = sshll.u32 %s381_s12, 6  ;;  %v393_v12 = vld [vmem:[%s2272_s1] sm:$0xff]  ;;  %s1841_s12 = smov 17   ;;  %v1519_v30 = vld [vmem:[%s2280_s9 + $0x18] sm:$0xff]  ;;  %v1549_v31 = vld [vmem:[%s2281_s10 + $0x8] sm:$0xff]  ;;  %v501_v36 = vshrl.u32 %v500_v33, 7 }
  0x18   : > { %1775 = vset.pattern.permute.xlu1 %v1839_v2  ;;  %s384_s24 = scalar_lea.vmem %s2287_s0, %s1722_s15  ;;  %s1844_s15 = smov 1   ;;  %v1393_v23 = vld [vmem:[%s2278_s7] sm:$0xff]  ;;  %v1551_v32 = vld [vmem:[%s2281_s10 + $0x18] sm:$0xff]  ;;  %v1698_v58 = vld [vmem:[%s2275_s4 + $0x8] sm:$0x3]  ;;  %vm692_vm4 = vcmask 121856  }
  0x19   : > { %v1971_v4 = vld [vmem:[%s384_s24 + $0x38] sm:$0xff]  ;;  %v1973_v5 = vld [vmem:[%s384_s24 + $0x30] sm:$0xff]  ;;  %v1975_v6 = vld [vmem:[%s384_s24 + $0x28] sm:$0xff]  ;;  %v2056_v40 = vsub.s32 1, %v501_v36  ;;  %v2058_v41 = vsub.s32 0, %v501_v36  ;;  %vm1091_vm5 = vcmask 924672  }
  0x1a   : > { %422 = vmatprep.subr.mxu1 %v1971_v4  ;;  %v1978_v7 = vld [vmem:[%s384_s24 + $0x20] sm:$0xff]  ;;  %v1981_v8 = vld [vmem:[%s384_s24 + $0x18] sm:$0xff]  ;;  %v1984_v9 = vld [vmem:[%s384_s24 + $0x10] sm:$0xff]  ;;  %vm794_vm6 = vcmask 7168   ;;  %vm989_vm7 = vcmask 1039360   ;;  %vm1193_vm8 = vcmask 916480  }
  0x1b   : > { %480 = vperm.xlu0 %1774, %v477_v3   ;;  %423 = vmatpush1.msra.mxu1 %v1973_v5  ;;  %v1987_v10 = vld [vmem:[%s384_s24 + $0x8] sm:$0xff]  ;;  %v1990_v11 = vld [vmem:[%s384_s24] sm:$0xff]  ;;  %s1847_s24 = smov 111   ;;  %vm1295_vm9 = vcmask 908288  }
  0x1c   : > { %424 = vmatprep.subr.mxu1 %v1975_v6  ;;  %v1516_v24 = vld [vmem:[%s2280_s9] sm:$0xff]  ;;  %v1701_v0 = vld [vmem:[%s2275_s4 + $0xa] sm:$0x3]  ;;  %v2092_v2 = vld [vmem:[%s2275_s4 + $0xc] sm:$0x3] }
  0x1d   : > { %425 = vmatpush1.msra.mxu1 %v1978_v7  ;;  %v1548_v26 = vld [vmem:[%s2281_s10] sm:$0xff] }
  0x1e   : > { %426 = vmatprep.subr.mxu1 %v1981_v8  ;;  %v1401_v27 = vld [vmem:[%s2279_s8] sm:$0xff] }
  0x1f   : > { %427 = vmatpush1.msra.mxu1 %v1984_v9  ;;  %v498_v37 = vld [vmem:[%s2275_s4] sm:$0x3]  ;;  %v1688_v47 = vld [vmem:[%s2275_s4 + $0x2] sm:$0x3]  ;;  %v1692_v55 = vld [vmem:[%s2275_s4 + $0x4] sm:$0x3] }
  0x20   : > { %428 = vmatprep.subr.mxu1 %v1987_v10  ;;  %v507_v42 = vrot.slane %v498_v37, %v2056_v40  ;;  %v503_v43 = vrot.slane %v498_v37, %v2058_v41  ;;  %v532_v50 = vrot.slane %v1688_v47, %v2056_v40  ;;  %v528_v52 = vrot.slane %v1688_v47, %v2058_v41  ;;  %v512_v53 = vld [vmem:[%s2273_s2] sm:$0xff] }
  0x21   : > { %429 = vmatpush1.msra.mxu1 %v1990_v11  ;;  %v1695_v60 = vld [vmem:[%s2275_s4 + $0x6] sm:$0x3]  ;;  %v707_v62 = vrot.slane %v1692_v55, %v2056_v40  ;;  %v703_v63 = vrot.slane %v1692_v55, %v2058_v41 }
  0x22   : > { %1687 = vmatmul.mubr.msk.f32.vlgmr.msra.gmra.mxu1 %vm394_vm0, %v393_v12  ;;  %v1689_v12 = vld [vmem:[%s2273_s2 + $0x8] sm:$0xff] }
  0x23   : > { %681 = vmatprep.mubr.f32.mxu1 %v1838_v1 }
  0x92   : > { %v473_v13 = vpop.permute.xlu0 %472 }
  0x96   : > { %v481_v16 = vpop.permute.xlu0 %480 }
  0xe2   : > { %v464_v14 = vpop.f32.mrf.mxu1 }
  0xe3   : > { %v475_v15 = vmul.f32 %v473_v13, %v464_v14 }
  0xe4   : > { %v466_v17 = vpop.f32.mrf.mxu1 }
  0xe5   : > { %v483_v18 = vadd.f32 %v481_v16, %v475_v15  ;;  %v476_v20 = vmul.f32 %v473_v13, %v466_v17  ;;  %v898_v13 = vrot.slane %v1698_v58, %v2058_v41  ;;  %v902_v17 = vrot.slane %v1698_v58, %v2056_v40  ;;  %v1702_v58 = vld [vmem:[%s2273_s2 + $0x28] sm:$0xff] }
  0xe7   : > { %v1999_v19 = vmax.f32 %v483_v18, 0.0  ;;  %v484_v21 = vadd.f32 %v481_v16, %v476_v20  ;;  %v805_v18 = vrot.slane %v1695_v60, %v2058_v41 }
  0xe9   : > { %513 = vrot.lane.b32.xlu0 %v1999_v19, %s2283_s30  ;;  %489 = vrot.lane.b32.xlu1 %v1999_v19, %s1841_s12  ;;  %v2006_v22 = vmax.f32 %v484_v21, 0.0  ;;  %v2106_v21 = vld [vmem:[%s2275_s4 + $0xe] sm:$0x3] }
  0xeb   : > { %v906_v37 = vmul.f32 %v902_v17, %v2006_v22 }
  0xed   : > { %688 = vrot.lane.b32.xlu0 %v1999_v19, %s1842_s13  ;;  %985 = vrot.lane.b32.xlu1 %v1999_v19, %s1843_s14 }
  0xf1   : > { %790 = vrot.lane.b32.xlu0 %v1999_v19, %s1844_s15  ;;  %491 = vrot.lane.b32.xlu1 %v2006_v22, %s1841_s12 }
  0xf5   : > { %987 = vrot.lane.b32.xlu0 %v2006_v22, %s1843_s14  ;;  %515 = vrot.lane.b32.xlu1 %v2006_v22, %s2283_s30  ;;  %s1848_s14 = smov [#allocation2]  }
  0xf9   : > { %1089 = vrot.lane.b32.xlu0 %v2006_v22, %s1845_s16  ;;  %690 = vrot.lane.b32.xlu1 %v2006_v22, %s1842_s13  ;;  %s377_s13 = sand.u32 1, %s1828_s18  }
  0xfd   : > { %1191 = vrot.lane.b32.xlu0 %v2006_v22, %s1846_s22  ;;  %792 = vrot.lane.b32.xlu1 %v2006_v22, %s1844_s15  ;;  %s1684_s15 = sshll.u32 %s377_s13, 6 }
  0xfe   : > { %s2203_s30 = scalar_lea.vmem [#allocation2], %s1684_s15  ;;  %s1780_s15 = sshll.u32 %s1848_s14, 4  ;;  %s1781_s15 = int_to_ptr.vmem [resolvable:$false] %s1780_s15 }
  0xff   : > { %s1618_s25 = sshll.u32 %s2203_s30, 4  ;;  %s2225_s25 = int_to_ptr.vmem [resolvable:$true] %s1618_s25 }
 0x100   : > { %p1783_p0 = scmp.lt.s32.totalorder %s2225_s25, %s1781_s15 }
 0x101   : > { %1293 = vrot.lane.b32.xlu0 %v2006_v22, %s1847_s24  ;;  %1087 = vrot.lane.b32.xlu1 %v1999_v19, %s1845_s16  ;;  %s1723_s16 = sshll.u32 %s1931_s21, 10  ;;  %s2230_s21 = scalar_lea.sflag [#allocation3], %s377_s13 }
 0x102   : > { %s2222_s12 = scalar_lea.hbm %s2282_s11, %s1723_s16  ;;  %s1782_s16 = scalar_lea.vmem %s1781_s15, 2048 }
 0x105   : > { %1396 = vperm.xlu0 %1774, %v1393_v23   ;;  %1189 = vrot.lane.b32.xlu1 %v1999_v19, %s1846_s22  ;;  %v1000_v23 = vrot.slane %v1701_v0, %v2058_v41 }
 0x109   : > { %1522 = vperm.xlu0 %1774, %v1516_v24   ;;  %1291 = vrot.lane.b32.xlu1 %v1999_v19, %s1847_s24  ;;  %v1106_v24 = vrot.slane %v2092_v2, %v2056_v40  ;;  %s1776_s24 = scalar_lea.vmem %s2225_s25, 1024 }
 0x10a   : > { %p1777_p11 = scmp.ne.s32.totalorder %s2225_s25, %s1776_s24  ;;  %p1784_p1 = scmp.lt.s32.totalorder %s1782_s16, %s1776_s24 }
 0x10c   : > { %p1778_p12 = pnand %p1777_p11, %p1948_p5  ;;  %p1785_p2 = por %p1784_p1, %p1783_p0 }
 0x10d   : > { %1532 = vperm.xlu0 %1774, %v1518_v25   ;;  %1404 = vperm.xlu1 %1775, %v1401_v27   ;;  %v2116_v27 = vld [vmem:[%s2275_s4 + $0x10] sm:$0x3] }
 0x10e   : > { %p1779_p13 = pneg %p1778_p12 }
 0x110   : > { %p1786_p3 = pnand %p1785_p2, %p1779_p13 }
 0x111   : > { %1554 = vperm.xlu0 %1774, %v1548_v26   ;;  %1527 = vperm.xlu1 %1775, %v1517_v29   ;;  %v809_v26 = vrot.slane %v1695_v60, %v2056_v40  ;;  %v1004_v29 = vrot.slane %v1701_v0, %v2056_v40  ;;  %v1705_v60 = vld [vmem:[%s2273_s2 + $0x30] sm:$0xff]  ;;  %v1708_v0 = vld [vmem:[%s2273_s2 + $0x38] sm:$0xff] }
 0x115   : > { %1564 = vperm.xlu0 %1774, %v1550_v28   ;;  %1537 = vperm.xlu1 %1775, %v1519_v30  }
 0x119   : > { %1559 = vperm.xlu1 %1775, %v1549_v31   ;;  %v1693_v31 = vld [vmem:[%s2273_s2 + $0x10] sm:$0xff] }
 0x11d   : > { %1569 = vperm.xlu1 %1775, %v1551_v32   ;;  %v905_v32 = vmul.f32 %v898_v13, %v1999_v19  ;;  %v1310_v19 = vrot.slane %v2116_v27, %v2056_v40 }
 0x15b   : > { %v514_v34 = vpop.permute.xlu0 %513  ;;  %v490_v35 = vpop.permute.xlu1 %489 }
 0x15c   : > { %v497_v44 = vsel %vm493_vm1, 0.0, %v490_v35  ;;  %v521_v54 = vsel %vm517_vm2, 0.0, %v514_v34 }
 0x15d   : > { %v510_v51 = vmul.f32 %v503_v43, %v497_v44  ;;  %v535_v3 = vmul.f32 %v528_v52, %v521_v54  ;;  %v1102_v43 = vrot.slane %v2092_v2, %v2058_v41  ;;  %v1204_v54 = vrot.slane %v2106_v21, %v2058_v41 }
 0x15f   : > { %v689_v38 = vpop.permute.xlu0 %688  ;;  %v2054_v39 = vpop.permute.xlu1 %985 }
 0x160   : > { %v696_v14 = vsel %vm692_vm4, 0.0, %v689_v38 }
 0x161   : > { %v710_v28 = vmul.f32 %v703_v63, %v696_v14  ;;  %v1306_v63 = vrot.slane %v2116_v27, %v2058_v41  ;;  %v1711_v41 = vld [vmem:[%s2273_s2 + $0x40] sm:$0xff] }
 0x163   : > { %v2062_v45 = vpop.permute.xlu0 %790  ;;  %v492_v46 = vpop.permute.xlu1 %491 }
 0x164   : > { %v494_v48 = vsel %vm493_vm1, %v490_v35, %v492_v46  ;;  %v798_v33 = vsel %vm794_vm6, 0.0, %v2062_v45 }
 0x165   : > { %v511_v49 = vmul.f32 %v507_v42, %v494_v48  ;;  %v812_v22 = vmul.f32 %v805_v18, %v798_v33 }
 0x167   : > { %v988_v56 = vpop.permute.xlu0 %987  ;;  %647 = vmatprep.subr.mxu1 %v511_v49  ;;  %v516_v57 = vpop.permute.xlu1 %515 }
 0x168   : > { %648 = vmatpush1.msra.mxu1 %v510_v51  ;;  %v518_v59 = vsel %vm517_vm2, %v514_v34, %v516_v57  ;;  %v1208_v34 = vrot.slane %v2106_v21, %v2056_v40  ;;  %v990_v44 = vsel %vm989_vm7, %v2054_v39, %v988_v56  ;;  %v1696_v40 = vld [vmem:[%s2273_s2 + $0x18] sm:$0xff] }
 0x169   : > { %v536_v61 = vmul.f32 %v532_v50, %v518_v59  ;;  %1691 = vmatmul.mubr.msk.f32.vlgmr.msra.gmra.mxu1 %vm539_vm3, %v512_v53  ;;  %v1699_v50 = vld [vmem:[%s2273_s2 + $0x20] sm:$0xff]  ;;  %v1007_v51 = vmul.f32 %v1000_v23, %v990_v44 }
 0x16a   : > { %781 = vmatprep.mubr.f32.mxu1 %v1838_v1 }
 0x16b   : > { %v1090_v15 = vpop.permute.xlu0 %1089  ;;  %573 = vmatprep.subr.mxu0 %v536_v61  ;;  %v691_v16 = vpop.permute.xlu1 %690 }
 0x16c   : > { %v693_v20 = vsel %vm692_vm4, %v689_v38, %v691_v16  ;;  %574 = vmatpush1.msra.mxu0 %v535_v3  ;;  %v1095_v30 = vsel %vm1091_vm5, %v1090_v15, 0.0  ;;  %v993_v38 = vsel %vm989_vm7, %v988_v56, 0.0 }
 0x16d   : > { %v711_v25 = vmul.f32 %v707_v62, %v693_v20  ;;  %1690 = vmatmul.mubr.msk.f32.vlgmr.msra.gmra.mxu0 %vm539_vm3, %v1689_v12  ;;  %v1110_v46 = vmul.f32 %v1106_v24, %v1095_v30 }
 0x16e   : > { %883 = vmatprep.mubr.f32.mxu0 %v1838_v1 }
 0x16f   : > { %v1192_v35 = vpop.permute.xlu0 %1191  ;;  %747 = vmatprep.subr.mxu1 %v711_v25  ;;  %v793_v36 = vpop.permute.xlu1 %792 }
 0x170   : > { %v795_v42 = vsel %vm794_vm6, %v2062_v45, %v793_v36  ;;  %748 = vmatpush1.msra.mxu1 %v710_v28  ;;  %v1197_v48 = vsel %vm1193_vm8, %v1192_v35, 0.0  ;;  %v1008_v45 = vmul.f32 %v1004_v29, %v993_v38 }
 0x171   : > { %v813_v47 = vmul.f32 %v809_v26, %v795_v42  ;;  %1694 = vmatmul.mubr.msk.f32.vlgmr.msra.gmra.mxu1 %vm539_vm3, %v1693_v31  ;;  %942 = vmatprep.subr.mxu1 %v906_v37  ;;  %v1212_v55 = vmul.f32 %v1208_v34, %v1197_v48 }
 0x172   : > { %943 = vmatpush1.msra.mxu1 %v905_v32  ;;  %976 = vmatprep.mubr.f32.mxu1 %v1838_v1 }
 0x173   : > { %v1294_v49 = vpop.permute.xlu0 %1293  ;;  %849 = vmatprep.subr.mxu0 %v813_v47  ;;  %v1088_v39 = vpop.permute.xlu1 %1087  ;;  %1146 = vmatprep.subr.mxu1 %v1110_v46 }
 0x174   : > { %v1299_v52 = vsel %vm1295_vm9, %v1294_v49, 0.0  ;;  %v1092_v53 = vsel %vm1091_vm5, %v1088_v39, %v1090_v15  ;;  %850 = vmatpush1.msra.mxu0 %v812_v22 }
 0x175   : > { %v1314_v56 = vmul.f32 %v1310_v19, %v1299_v52  ;;  %v1109_v57 = vmul.f32 %v1102_v43, %v1092_v53  ;;  %1697 = vmatmul.mubr.msk.f32.vlgmr.msra.gmra.mxu0 %vm539_vm3, %v1696_v40  ;;  %1044 = vmatprep.subr.mxu0 %v1008_v45 }
 0x176   : > { %1700 = vmatmul.mubr.msk.f32.vlgmr.msra.gmra.mxu1 %vm539_vm3, %v1699_v50  ;;  %1045 = vmatpush1.msra.mxu0 %v1007_v51 }
 0x177   : > { %1248 = vmatprep.subr.mxu0 %v1212_v55  ;;  %v1190_v59 = vpop.permute.xlu1 %1189  ;;  %1147 = vmatpush1.msra.mxu1 %v1109_v57  ;;  %v1412_v57 = vld [vmem:[%s2274_s3 + $0x8] sm:$0xff] }
 0x178   : > { %v1194_v61 = vsel %vm1193_vm8, %v1190_v59, %v1192_v35  ;;  %1078 = vmatprep.mubr.f32.mxu0 %v1838_v1  ;;  %1350 = vmatprep.subr.mxu1 %v1314_v56  ;;  %v1411_v56 = vld [vmem:[%s2274_s3] sm:$0xff]  ;;  %v1414_v59 = vld [vmem:[%s2274_s3 + $0x18] sm:$0xff] }
 0x179   : > { %v1211_v62 = vmul.f32 %v1204_v54, %v1194_v61  ;;  %1703 = vmatmul.mubr.msk.f32.vlgmr.msra.gmra.mxu0 %vm539_vm3, %v1702_v58  ;;  %1180 = vmatprep.mubr.f32.mxu1 %v1838_v1  ;;  %v1413_v58 = vld [vmem:[%s2274_s3 + $0x10] sm:$0xff] }
 0x17a   : > { %1706 = vmatmul.mubr.msk.f32.vlgmr.msra.gmra.mxu1 %vm539_vm3, %v1705_v60  ;;  %1282 = vmatprep.mubr.f32.mxu0 %v1838_v1 }
 0x17b   : > { %1249 = vmatpush1.msra.mxu0 %v1211_v62  ;;  %v1292_v2 = vpop.permute.xlu1 %1291  ;;  %1384 = vmatprep.mubr.f32.mxu1 %v1838_v1 }
 0x17c   : > { %v1296_v3 = vsel %vm1295_vm9, %v1292_v2, %v1294_v49 }
 0x17d   : > { %v1313_v12 = vmul.f32 %v1306_v63, %v1296_v3  ;;  %1709 = vmatmul.mubr.msk.f32.vlgmr.msra.gmra.mxu0 %vm539_vm3, %v1708_v0 }
 0x17e   : > { %1491 = vmatprep.mubr.f32.mxu0 %v1838_v1 }
 0x17f   : > { %1351 = vmatpush1.msra.mxu1 %v1313_v12 }
 0x180   : > { %1712 = vmatmul.mubr.msk.f32.vlgmr.msra.gmra.mxu1 %vm539_vm3, %v1711_v41  ;;  %v1397_v40 = vpop.permute.xlu0 %1396 }
 0x184   : > { %v1523_v60 = vpop.permute.xlu0 %1522 }
 0x188   : > { %v1405_v50 = vpop.permute.xlu1 %1404  ;;  %v1533_v62 = vpop.permute.xlu0 %1532 }
 0x18c   : > { %v1528_v61 = vpop.permute.xlu1 %1527  ;;  %v1555_v3 = vpop.permute.xlu0 %1554 }
 0x190   : > { %v1538_v63 = vpop.permute.xlu1 %1537 }
 0x229   : > { %v683_v13 = vpop.f32.mrf.mxu1 }
 0x22b   : > { %v685_v15 = vpop.f32.mrf.mxu1 }
 0x22d   : > { %v609_v14 = vpop.f32.mrf.mxu0 }
 0x22e   : > { %v684_v16 = vadd.f32 %v683_v13, %v609_v14 }
 0x22f   : > { %v611_v17 = vpop.f32.mrf.mxu0 }
 0x230   : > { %v686_v20 = vadd.f32 %v685_v15, %v611_v17  ;;  %v1560_v17 = vpop.permute.xlu1 %1559 }
 0x231   : > { %v783_v18 = vpop.f32.mrf.mxu1 }
 0x232   : > { %v788_v21 = vadd.f32 %v783_v18, %v684_v16 }
 0x233   : > { %v785_v23 = vpop.f32.mrf.mxu1 }
 0x234   : > { %v789_v25 = vadd.f32 %v785_v23, %v686_v20 }
 0x235   : > { %v885_v24 = vpop.f32.mrf.mxu0 }
 0x236   : > { %v890_v26 = vadd.f32 %v885_v24, %v788_v21  ;;  %v978_v27 = vpop.f32.mrf.mxu1 }
 0x237   : > { %v887_v28 = vpop.f32.mrf.mxu0 }
 0x238   : > { %v983_v29 = vadd.f32 %v978_v27, %v890_v26  ;;  %v891_v30 = vadd.f32 %v887_v28, %v789_v25  ;;  %v980_v31 = vpop.f32.mrf.mxu1 }
 0x239   : > { %v1080_v32 = vpop.f32.mrf.mxu0 }
 0x23a   : > { %v984_v33 = vadd.f32 %v980_v31, %v891_v30  ;;  %v1085_v34 = vadd.f32 %v1080_v32, %v983_v29  ;;  %v1182_v35 = vpop.f32.mrf.mxu1  ;;  %v1565_v29 = vpop.permute.xlu0 %1564 }
 0x23b   : > { %v1082_v36 = vpop.f32.mrf.mxu0 }
 0x23c   : > { %v1187_v37 = vadd.f32 %v1182_v35, %v1085_v34  ;;  %v1086_v38 = vadd.f32 %v1082_v36, %v984_v33  ;;  %v1184_v42 = vpop.f32.mrf.mxu1 }
 0x23d   : > { %v1284_v19 = vpop.f32.mrf.mxu0 }
 0x23e   : > { %v1188_v43 = vadd.f32 %v1184_v42, %v1086_v38  ;;  %v1289_v44 = vadd.f32 %v1284_v19, %v1187_v37  ;;  %v1570_v38 = vpop.permute.xlu1 %1569 }
 0x23f   : > { %v1286_v46 = vpop.f32.mrf.mxu0 }
 0x240   : > { %v1290_v47 = vadd.f32 %v1286_v46, %v1188_v43  ;;  %v1386_v22 = vpop.f32.mrf.mxu1 }
 0x241   : > { %v1391_v48 = vadd.f32 %v1386_v22, %v1289_v44 }
 0x242   : > { %v1388_v45 = vpop.f32.mrf.mxu1 }
 0x243   : > { %v1399_v49 = vmul.f32 %v1397_v40, %v1391_v48  ;;  %v1392_v39 = vadd.f32 %v1388_v45, %v1290_v47 }
 0x245   : > { %v1400_v51 = vmul.f32 %v1397_v40, %v1392_v39  ;;  %v1407_v52 = vadd.f32 %v1405_v50, %v1399_v49 }
 0x247   : > { %v1408_v53 = vadd.f32 %v1405_v50, %v1400_v51  ;;  %v1409_v55 = vmax.f32 %v1407_v52, 0.0 }
 0x249   : > { %v1410_v54 = vmax.f32 %v1408_v53, 0.0 }
 0x24b   : > { %1457 = vmatprep.subr.mxu0 %v1410_v54 }
 0x24c   : > { %1458 = vmatpush1.msra.mxu0 %v1409_v55 }
 0x24d   : > { %1713 = vmatmul.mubr.msk.f32.vlgmr.msra.gmra.mxu0 %vm539_vm3, %v1411_v56 }
 0x24e   : > { %1497 = vmatprep.mubr.f32.mxu0 %v1838_v1 }
 0x251   : > { %1714 = vmatmul.mubr.msk.f32.gmra.mxu0 %vm539_vm3, %v1412_v57 }
 0x252   : > { %1503 = vmatprep.mubr.f32.mxu0 %v1838_v1 }
 0x255   : > { %1715 = vmatmul.mubr.msk.f32.gmra.mxu0 %vm539_vm3, %v1413_v58 }
 0x256   : > { %1509 = vmatprep.mubr.f32.mxu0 %v1838_v1 }
 0x259   : > { %1716 = vmatmul.mubr.msk.f32.gmra.mxu0 %vm539_vm3, %v1414_v59 }
 0x30d   : > { %v1493_v0 = vpop.f32.mrf.mxu0 }
 0x30e   : > { %v1540_v2 = vmul.f32 %v1523_v60, %v1493_v0 }
 0x30f   : > { %v1495_v12 = vpop.f32.mrf.mxu0 }
 0x310   : > { %v1572_v41 = vadd.f32 %v1555_v3, %v1540_v2  ;;  %v1541_v13 = vmul.f32 %v1523_v60, %v1495_v12 }
 0x311   : > { %v1499_v1 = vpop.f32.mrf.mxu0 }
 0x312   : > { %v1580_v14 = vadd.f32 %v1572_v41, %v1990_v11  ;;  %v1573_v15 = vadd.f32 %v1555_v3, %v1541_v13  ;;  %v1542_v16 = vmul.f32 %v1528_v61, %v1499_v1 }
 0x313   : > { %v1501_v18 = vpop.f32.mrf.mxu0 }
 0x314   : > { %v1588_v20 = vmax.f32 %v1580_v14, 0.0  ;;  %v1581_v21 = vadd.f32 %v1573_v15, %v1987_v10  ;;  %v1574_v23 = vadd.f32 %v1560_v17, %v1542_v16  ;;  %v1543_v24 = vmul.f32 %v1528_v61, %v1501_v18 }
 0x315   : > { %v1505_v25 = vpop.f32.mrf.mxu0 }
 0x316   : > { %1596 = vst [vmem:[%s2203_s30] sm:$0xff] %v1588_v20  ;;  %v1589_v26 = vmax.f32 %v1581_v21, 0.0  ;;  %v1582_v27 = vadd.f32 %v1574_v23, %v1984_v9  ;;  %v1575_v11 = vadd.f32 %v1560_v17, %v1543_v24  ;;  %v1544_v28 = vmul.f32 %v1533_v62, %v1505_v25 }
 0x317   : > { %v1507_v30 = vpop.f32.mrf.mxu0 }
 0x318   : > { %1597 = vst [vmem:[%s2203_s30 + $0x8] sm:$0xff] %v1589_v26  ;;  %v1590_v31 = vmax.f32 %v1582_v27, 0.0  ;;  %v1583_v10 = vadd.f32 %v1575_v11, %v1981_v8  ;;  %v1576_v32 = vadd.f32 %v1565_v29, %v1544_v28  ;;  %v1545_v33 = vmul.f32 %v1533_v62, %v1507_v30 }
 0x319   : > { %v1511_v34 = vpop.f32.mrf.mxu0 }
 0x31a   : > { %1598 = vst [vmem:[%s2203_s30 + $0x10] sm:$0xff] %v1590_v31  ;;  %v1591_v35 = vmax.f32 %v1583_v10, 0.0  ;;  %v1584_v36 = vadd.f32 %v1576_v32, %v1978_v7  ;;  %v1577_v9 = vadd.f32 %v1565_v29, %v1545_v33  ;;  %v1546_v37 = vmul.f32 %v1538_v63, %v1511_v34 }
 0x31b   : > { %v1513_v42 = vpop.f32.mrf.mxu0 }
 0x31c   : > { %1599 = vst [vmem:[%s2203_s30 + $0x18] sm:$0xff] %v1591_v35  ;;  %v1592_v19 = vmax.f32 %v1584_v36, 0.0  ;;  %v1585_v8 = vadd.f32 %v1577_v9, %v1975_v6  ;;  %v1578_v43 = vadd.f32 %v1570_v38, %v1546_v37  ;;  %v1547_v44 = vmul.f32 %v1538_v63, %v1513_v42 }
 0x31e   : > { %1600 = vst [vmem:[%s2203_s30 + $0x20] sm:$0xff] %v1592_v19  ;;  %v1593_v46 = vmax.f32 %v1585_v8, 0.0  ;;  %v1586_v47 = vadd.f32 %v1578_v43, %v1973_v5  ;;  %v1579_v7 = vadd.f32 %v1570_v38, %v1547_v44 }
 0x320   : > { %1601 = vst [vmem:[%s2203_s30 + $0x28] sm:$0xff] %v1593_v46  ;;  %v1594_v22 = vmax.f32 %v1586_v47, 0.0  ;;  %v1587_v48 = vadd.f32 %v1579_v7, %v1971_v4 }
 0x322   : > { %1602 = vst [vmem:[%s2203_s30 + $0x30] sm:$0xff] %v1594_v22  ;;  %v1595_v6 = vmax.f32 %v1587_v48, 0.0 }
 0x324   : > { %1603 = vst [vmem:[%s2203_s30 + $0x38] sm:$0xff] %v1595_v6 }
 0x325   : > { %1789 = shalt.err (!%p1786_p3)
}
 0x326   : > { %s1790_s13 = scalar_lea.hbm %s2222_s12, 1024  ;;  %s1794_s22 = scalar_lea.hbm %s2282_s11, 2048 }
 0x327   : > { %p1791_p4 = scmp.ne.s32.totalorder %s2222_s12, %s1790_s13  ;;  %p1795_p9 = scmp.lt.s32.totalorder %s2222_s12, %s2282_s11 }
 0x328   : > { %p1796_p10 = scmp.lt.s32.totalorder %s1794_s22, %s1790_s13 }
 0x329   : > { %p1792_p7 = pnand %p1791_p4, %p1948_p5 }
 0x32a   : > { %p1797_p11 = por %p1796_p10, %p1795_p9 }
 0x32b   : > { %p1793_p8 = pneg %p1792_p7 }
 0x32d   : > { %p1798_p12 = pnand %p1797_p11, %p1793_p8 }
 0x32f   : > { %1801 = shalt.err (!%p1798_p12)
}
 0x330   : > { %s1849_s24 = smov 256   ;;  %s2288_s15 = smov 16  }
 0x331   : > { %1724 = dma.vmem_to_hbm [thread:$0]  (%p1948_p5), %s2225_s25, 1024, %s2222_s12, %s2230_s21, %s1849_s24, %s1849_s24, %s2288_s15  }
 0x332 PF: > { %p1730_p13 = scmp.ge.s32.totalorder %s1836_s20, 2  ;;  %s1633_s16 = sand.u32 1, %s1824_s17  }
 0x333   : > { %s1634_s0 = scalar_lea.sflag [#allocation3], %s1633_s16 }
 0x334   : > { %p1727_p0 = pnand %p1730_p13, %p1952_p6 }
 0x336   : > { %p1728_p1 = pneg %p1727_p0 }
 0x338   : > { %1819 = dma.done.wait (%p1728_p1), %s1634_s0, 1024  }
 0x339   : > { %1821 = vsyncadd (%p1728_p1), %s1634_s0, 4294966272  ;;  %p21_p2 = scmp.ge.s32.totalorder %s1935_s23, 4   ;;  %s2289_s17 = smov %s1828_s18 }
 0x33a   : > { %s2290_s18 = smov %s1832_s19  ;;  %s2291_s19 = smov %s1946_s26 }
 0x33b   : > { %s2292_s20 = smov %s1935_s23  ;;  %23 = sbr.rel (!%p21_p2) target bundleno = 5 (0x5), region = 115 }
 0x340   :  { %1639 = vsyncpa [#allocation3], 1 }
 0x341   :  { %1641 = vsyncpa [#allocation3 + $0x1], 1 }

</bundles_post_ra>
